<compile_context>
chip_gen: v6e
topology: v6e:2x2x1
jax: 0.10.0
libtpu: 0.0.40
codegen_flags: <defaults>
</compile_context>

<pallas_src>
import jax
import jax.numpy as jnp
from jax.experimental import pallas as pl
from jax.experimental.pallas import tpu as pltpu

_MIB = 1024 * 1024
_PAD_BIAS = 1e37  # huge bias for padded N columns -> logit ~ -inf -> weight 0


def _round_up(x, m):
    return ((x + m - 1) // m) * m


def _vmem_capacity_bytes(default=64 * _MIB):
    """Physical VMEM of the local TPU generation (guarded; the fallback is the
    smallest current generation, v7x's 64 MiB, so the result is always safe)."""
    try:
        cap = getattr(pltpu.get_tpu_info(), "vmem_capacity_bytes", None)
        if cap:
            return int(cap)
    except Exception:
        pass
    return default


def _footprint_bytes(tB, tN, B_pad, Da, Ds, ib):
    blk_in = tB * Da * ib + Da * tN * ib + tN * Ds * ib   # q_aug, t_aug, source blocks
    blk_out = tB * Ds * 4
    scratch = B_pad * (Ds + 2) * 4                        # m, l, acc (full-B resident)
    temps = 3 * tB * tN * 4                               # x, p + one live f32 temp
    return 2 * (blk_in + blk_out) + scratch + temps       # 2x: double-buffered blocks


def _choose_tiles(B, N, Da, Ds, ib, budget, tb_max, tn_max):
    # N tile: target ~2 MiB streamed per grid step (amortizes the ~0.35 us fixed
    # per-step overhead even when Dt/Ds are small).
    tN = _round_up(max(128, (2 * _MIB) // ((Da + Ds) * ib)), 128)
    if tn_max is not None:
        tN = min(tN, max(128, _round_up(tn_max, 128)))
    tN = min(tN, _round_up(N, 128))
    # B tile: keep the whole batch in one tile when possible (q_aug/acc are small).
    tB = _round_up(B, 8)
    if tb_max is not None:
        tB = min(tB, max(8, _round_up(tb_max, 8)))
    # Shrink until the double-buffered working set fits the VMEM budget.
    while _footprint_bytes(tB, tN, _round_up(B, tB), Da, Ds, ib) > budget:
        if tB > 256:
            tB = _round_up(tB // 2, 8)
        elif tN > 512:
            tN = _round_up(tN // 2, 128)
        elif tB > 8:
            tB = _round_up(tB // 2, 8)
        elif tN > 128:
            tN = _round_up(tN // 2, 128)
        else:
            break  # smallest tiles; for extreme B*Ds the full-B scratch may still be large
    if tN >= N:
        tN = N  # single N tile: full-extent block, no padding needed
    return tB, tN


def _make_kernel(tB, Ds, fast_math):
    def kernel(q_ref, t_ref, s_ref, y_ref, m_sc, l_sc, acc_sc):
        n = pl.program_id(0)                              # N (reduction) axis, outer
        off = pl.multiple_of(pl.program_id(1) * tB, tB)   # this B tile's scratch rows
        rows = pl.ds(off, tB)

        @pl.when(n == 0)
        def _init():
            m_sc[rows, :] = jnp.full((tB, 1), -jnp.inf, jnp.float32)
            l_sc[rows, :] = jnp.zeros((tB, 1), jnp.float32)
            acc_sc[rows, :] = jnp.zeros((tB, Ds), jnp.float32)

        # logits: x[i, j] = -||q_i - t_j||^2 / (2*std_i^2). Scale and both norm
        # biases are folded into the augmented operands -> one MXU matmul, no
        # per-element VPU work, and padded columns come out ~ -inf for free.
        x = jnp.dot(q_ref[...], t_ref[...], preferred_element_type=jnp.float32)

        # Online (flash-style) softmax accumulation over the N tiles.
        m_prev = m_sc[rows, :]
        m_new = jnp.maximum(m_prev, jnp.max(x, axis=1, keepdims=True))
        alpha = jnp.exp(m_prev - m_new)
        p = jnp.exp(x - m_new)                            # un-normalized weights (f32)
        l_sc[rows, :] = alpha * l_sc[rows, :] + jnp.sum(p, axis=1, keepdims=True)
        acc_sc[rows, :] = alpha * acc_sc[rows, :] + jnp.dot(
            p.astype(s_ref.dtype), s_ref[...], preferred_element_type=jnp.float32)
        m_sc[rows, :] = m_new

        @pl.when(n == pl.num_programs(0) - 1)
        def _finalize():
            l = l_sc[rows, :]
            inv_l = pl.reciprocal(l, approx=True) if fast_math else 1.0 / l
            y_ref[...] = (acc_sc[rows, :] * inv_l).astype(y_ref.dtype)

    return kernel


def gaussian_kernel_regression(query, std, source, targets, *,
                               fast_math=False, bf16_stream=None,
                               tb_max=None, tn_max=None):
    """query [B, Dt], std [B], source [N, Ds], targets [N, Dt] -> [B, Ds] float32.

    The buffers derived from (source, targets) correspond to the torch module's
    registered buffers and would be prepared once per model; they are built here
    in the wrapper so the example is self-contained.
    """
    query = jnp.asarray(query, jnp.float32)
    std = jnp.asarray(std, jnp.float32)
    source = jnp.asarray(source, jnp.float32)
    targets = jnp.asarray(targets, jnp.float32)

    B, Dt = query.shape
    N, Ds = source.shape
    assert targets.shape == (N, Dt) and std.shape == (B,)
    Da = Dt + 2

    if bf16_stream is None:
        bf16_stream = fast_math
    stream_dtype = jnp.bfloat16 if bf16_stream else jnp.float32
    ib = 2 if bf16_stream else 4

    phys_vmem = _vmem_capacity_bytes()
    budget = int(0.55 * phys_vmem)
    tB, tN = _choose_tiles(B, N, Da, Ds, ib, budget, tb_max, tn_max)
    num_b = -(-B // tB)
    num_n = -(-N // tN)
    B_pad = num_b * tB
    n_pad = num_n * tN

    # ---- fixed (register_buffer-like) operand preparation ------------------
    half_tt = 0.5 * jnp.sum(targets * targets, axis=1)                    # [N]
    if n_pad != N:
        targets_p = jnp.pad(targets, ((0, n_pad - N), (0, 0)))
        source_p = jnp.pad(source, ((0, n_pad - N), (0, 0)))
        half_tt_p = jnp.pad(half_tt, (0, n_pad - N), constant_values=_PAD_BIAS)
    else:
        targets_p, source_p, half_tt_p = targets, source, half_tt
    t_aug = jnp.concatenate(
        [targets_p.T, half_tt_p[None, :], jnp.ones((1, n_pad), jnp.float32)],
        axis=0).astype(stream_dtype)                                      # [Da, n_pad]
    source_p = source_p.astype(stream_dtype)                              # [n_pad, Ds]

    # ---- per-call (query/std) operand preparation ---------------------------
    inv_var = 1.0 / (std * std)                                           # [B]
    q_aug = jnp.concatenate(
        [query * inv_var[:, None],
         -inv_var[:, None],
         (-0.5 * jnp.sum(query * query, axis=1) * inv_var)[:, None]],
        axis=1)                                                           # [B, Da]
    if B_pad != B:
        q_aug = jnp.pad(q_aug, ((0, B_pad - B), (0, 0)))
    q_aug = q_aug.astype(stream_dtype)

    est = _footprint_bytes(tB, tN, B_pad, Da, Ds, ib)
    # Always set an explicit scoped-VMEM limit (v5e default is only 16 MiB) but
    # stay well under the smallest physical VMEM of the current generation.
    vmem_limit = int(min(max(int(1.5 * est), 32 * _MIB), int(0.6 * phys_vmem)))

    kernel = _make_kernel(tB, Ds, fast_math)
    y = pl.pallas_call(
        kernel,
        out_shape=jax.ShapeDtypeStruct((B_pad, Ds), jnp.float32),
        grid_spec=pltpu.PrefetchScalarGridSpec(
            num_scalar_prefetch=0,
            grid=(num_n, num_b),                               # N outer, B inner
            in_specs=[
                pl.BlockSpec((tB, Da), lambda n, b: (b, 0)),   # q_aug   (tiny)
                pl.BlockSpec((Da, tN), lambda n, b: (0, n)),   # t_aug   (streamed once)
                pl.BlockSpec((tN, Ds), lambda n, b: (n, 0)),   # source  (streamed once)
            ],
            out_specs=pl.BlockSpec((tB, Ds), lambda n, b: (b, 0)),
            scratch_shapes=[
                pltpu.VMEM((B_pad, 1), jnp.float32),    # running max  m
                pltpu.VMEM((B_pad, 1), jnp.float32),    # running sum  l
                pltpu.VMEM((B_pad, Ds), jnp.float32),   # weighted accumulator
            ],
        ),
        compiler_params=pltpu.CompilerParams(
            dimension_semantics=("arbitrary", "parallel"),
            vmem_limit_bytes=vmem_limit,
        ),
    )(q_aug, t_aug, source_p)
    return y[:B] if B_pad != B else y


def _reference(query, std, source, targets):
    # Pure-JAX transcription of the PyTorch forward (for verification).
    dist = jnp.sum((query[:, None, :] - targets[None, :, :]) ** 2, axis=2)  # [B, N]
    x = -dist / (2.0 * std[:, None] ** 2)
    lse = jax.scipy.special.logsumexp(x, axis=1, keepdims=True)
    w = jnp.exp(x - lse)
    return jnp.sum(source[None, :, :] * w[:, :, None], axis=1)


if __name__ == "__main__":
    key = jax.random.PRNGKey(0)
    k1, k2, k3, k4 = jax.random.split(key, 4)

    # Small shapes consistent with the module: B query points of dim Dt
    # regressed against N (target, source) pairs with Ds-dim source values.
    B, N, Dt, Ds = 4, 64, 8, 16
    source = jax.random.normal(k1, (N, Ds), dtype=jnp.float32)
    targets = jax.random.normal(k2, (N, Dt), dtype=jnp.float32)
    query = jax.random.normal(k3, (B, Dt), dtype=jnp.float32)
    std = jax.random.uniform(k4, (B,), dtype=jnp.float32, minval=0.5, maxval=1.5)

    y_ref = _reference(query, std, source, targets)

    # 1) precise path, single N tile / single B tile.
    y = jax.block_until_ready(gaussian_kernel_regression(query, std, source, targets))
    assert y.shape == (B, Ds)
    assert jnp.allclose(y, y_ref, atol=1e-3, rtol=1e-3), "precise single-tile mismatch"

    # 2) multi-tile path: several N tiles (ragged last tile handled by the
    #    huge-bias padded columns), several B tiles (online-softmax state sliced
    #    per b), and a non-multiple-of-8 batch (row padding + output slice).
    B2, N2 = 20, 300
    source2 = jax.random.normal(k1, (N2, Ds), dtype=jnp.float32)
    targets2 = jax.random.normal(k2, (N2, Dt), dtype=jnp.float32)
    query2 = jax.random.normal(k3, (B2, Dt), dtype=jnp.float32)
    std2 = jax.random.uniform(k4, (B2,), dtype=jnp.float32, minval=0.5, maxval=1.5)
    y2 = jax.block_until_ready(
        gaussian_kernel_regression(query2, std2, source2, targets2,
                                   tb_max=8, tn_max=128))
    y2_ref = _reference(query2, std2, source2, targets2)
    assert y2.shape == (B2, Ds)
    assert jnp.allclose(y2, y2_ref, atol=1e-3, rtol=1e-3), "tiled path mismatch"

    # 3) fast-math path (bf16-streamed operands, bf16 MXU, approx reciprocal) —
    #    loose tolerance (bf16 rounding of the folded bias terms).
    std3 = jax.random.uniform(k4, (B,), dtype=jnp.float32, minval=1.0, maxval=2.0)
    y3_ref = _reference(query, std3, source, targets)
    y3 = jax.block_until_ready(
        gaussian_kernel_regression(query, std3, source, targets, fast_math=True))
    assert bool(jnp.all(jnp.isfinite(y3)))
    assert jnp.allclose(y3, y3_ref, atol=2e-1, rtol=2e-1), "fast-math path mismatch"

    print("KERNEL_OK")
</pallas_src>

<mosaic_0001>
module attributes {stable_mosaic.version = 11 : i64} {
  func.func @kernel(%arg0: i32, %arg1: i32, %arg2: memref<8x10xf32, #tpu.memory_space<vmem>>, %arg3: memref<10x64xf32, #tpu.memory_space<vmem>>, %arg4: memref<64x16xf32, #tpu.memory_space<vmem>>, %arg5: memref<8x16xf32, #tpu.memory_space<vmem>>, %arg6: memref<8x1xf32, #tpu.memory_space<vmem>>, %arg7: memref<8x1xf32, #tpu.memory_space<vmem>>, %arg8: memref<8x16xf32, #tpu.memory_space<vmem>>) attributes {dimension_semantics = [#tpu.dimension_semantics<arbitrary>, #tpu.dimension_semantics<parallel>], iteration_bounds = array<i64: 1, 1>, scalar_prefetch = 0 : i64, scratch_operands = 3 : i64, tpu.core_type = #tpu.core_type<tc>, window_params = [{transform_indices = @transform_0, window_bounds = array<i64: 8, 10>}, {transform_indices = @transform_1, window_bounds = array<i64: 10, 64>}, {transform_indices = @transform_2, window_bounds = array<i64: 64, 16>}, {transform_indices = @transform_3, window_bounds = array<i64: 8, 16>}]} {
    %c8_i32 = arith.constant 8 : i32
    %0 = arith.muli %arg1, %c8_i32 : i32
    %1 = tpu.assume_multiple %0, 8 : i32
    %c0_i32 = arith.constant 0 : i32
    %2 = arith.cmpi eq, %arg0, %c0_i32 : i32
    %3 = arith.extui %2 : i1 to i32
    %c0_i32_0 = arith.constant 0 : i32
    %4 = arith.cmpi ne, %3, %c0_i32_0 : i32
    scf.if %4 {
      %cst_17 = arith.constant 0xFF800000 : f32
      %40 = vector.broadcast %cst_17 : f32 to vector<8x1xf32>
      %41 = arith.index_cast %1 : i32 to index
      %c0_18 = arith.constant 0 : index
      %42 = vector.load %arg6[%41, %c0_18] : memref<8x1xf32, #tpu.memory_space<vmem>>, vector<8x1xf32>
      tpu.vector_store %arg6[%41, %c0_18], %40 {strides = array<i32>} : memref<8x1xf32, #tpu.memory_space<vmem>>, vector<8x1xf32>,
      %cst_19 = arith.constant 0.000000e+00 : f32
      %43 = vector.broadcast %cst_19 : f32 to vector<8x1xf32>
      %44 = arith.index_cast %1 : i32 to index
      %c0_20 = arith.constant 0 : index
      %45 = vector.load %arg7[%44, %c0_20] : memref<8x1xf32, #tpu.memory_space<vmem>>, vector<8x1xf32>
      tpu.vector_store %arg7[%44, %c0_20], %43 {strides = array<i32>} : memref<8x1xf32, #tpu.memory_space<vmem>>, vector<8x1xf32>,
      %cst_21 = arith.constant 0.000000e+00 : f32
      %46 = vector.broadcast %cst_21 : f32 to vector<8x16xf32>
      %47 = arith.index_cast %1 : i32 to index
      %c0_22 = arith.constant 0 : index
      %48 = vector.load %arg8[%47, %c0_22] : memref<8x16xf32, #tpu.memory_space<vmem>>, vector<8x16xf32>
      tpu.vector_store %arg8[%47, %c0_22], %46 {strides = array<i32>} : memref<8x16xf32, #tpu.memory_space<vmem>>, vector<8x16xf32>,
    } else {
    }
    %c0 = arith.constant 0 : index
    %c0_1 = arith.constant 0 : index
    %5 = vector.load %arg2[%c0, %c0_1] : memref<8x10xf32, #tpu.memory_space<vmem>>, vector<8x10xf32>
    %c0_2 = arith.constant 0 : index
    %c0_3 = arith.constant 0 : index
    %6 = vector.load %arg3[%c0_2, %c0_3] : memref<10x64xf32, #tpu.memory_space<vmem>>, vector<10x64xf32>
    %cst = arith.constant dense<0.000000e+00> : vector<8x64xf32>
    %7 = tpu.matmul %5, %6, %cst {dimension_numbers = #tpu.dot_dimension_numbers<[1], [0], [0], [1], [0, 0, 1, 1], [], []>} : vector<8x10xf32>, vector<10x64xf32>, vector<8x64xf32> -> vector<8x64xf32>
    %8 = arith.index_cast %1 : i32 to index
    %c0_4 = arith.constant 0 : index
    %9 = vector.load %arg6[%8, %c0_4] : memref<8x1xf32, #tpu.memory_space<vmem>>, vector<8x1xf32>
    %cst_5 = arith.constant dense<0xFF800000> : vector<8xf32>
    %10 = vector.multi_reduction <maximumf>, %7, %cst_5 [1] : vector<8x64xf32> to vector<8xf32>
    %11 = vector.shape_cast %10 : vector<8xf32> to vector<8x1xf32>
    %12 = arith.maximumf %9, %11 : vector<8x1xf32>
    %13 = arith.subf %9, %12 : vector<8x1xf32>
    %14 = math.exp %13 : vector<8x1xf32>
    %15 = vector.broadcast %12 : vector<8x1xf32> to vector<8x64xf32>
    %16 = arith.subf %7, %15 : vector<8x64xf32>
    %17 = math.exp %16 : vector<8x64xf32>
    %18 = arith.index_cast %1 : i32 to index
    %c0_6 = arith.constant 0 : index
    %19 = vector.load %arg7[%18, %c0_6] : memref<8x1xf32, #tpu.memory_space<vmem>>, vector<8x1xf32>
    %20 = arith.mulf %14, %19 : vector<8x1xf32>
    %cst_7 = arith.constant dense<0.000000e+00> : vector<8xf32>
    %21 = vector.multi_reduction <add>, %17, %cst_7 [1] : vector<8x64xf32> to vector<8xf32>
    %22 = vector.shape_cast %21 : vector<8xf32> to vector<8x1xf32>
    %23 = arith.addf %20, %22 : vector<8x1xf32>
    %24 = arith.index_cast %1 : i32 to index
    %c0_8 = arith.constant 0 : index
    %25 = vector.load %arg7[%24, %c0_8] : memref<8x1xf32, #tpu.memory_space<vmem>>, vector<8x1xf32>
    tpu.vector_store %arg7[%24, %c0_8], %23 {strides = array<i32>} : memref<8x1xf32, #tpu.memory_space<vmem>>, vector<8x1xf32>,
    %26 = arith.index_cast %1 : i32 to index
    %c0_9 = arith.constant 0 : index
    %27 = vector.load %arg8[%26, %c0_9] : memref<8x16xf32, #tpu.memory_space<vmem>>, vector<8x16xf32>
    %28 = vector.broadcast %14 : vector<8x1xf32> to vector<8x16xf32>
    %29 = arith.mulf %28, %27 : vector<8x16xf32>
    %c0_10 = arith.constant 0 : index
    %c0_11 = arith.constant 0 : index
    %30 = vector.load %arg4[%c0_10, %c0_11] : memref<64x16xf32, #tpu.memory_space<vmem>>, vector<64x16xf32>
    %cst_12 = arith.constant dense<0.000000e+00> : vector<8x16xf32>
    %31 = tpu.matmul %17, %30, %cst_12 {dimension_numbers = #tpu.dot_dimension_numbers<[1], [0], [0], [1], [0, 0, 1, 1], [], []>} : vector<8x64xf32>, vector<64x16xf32>, vector<8x16xf32> -> vector<8x16xf32>
    %32 = arith.addf %29, %31 : vector<8x16xf32>
    %33 = arith.index_cast %1 : i32 to index
    %c0_13 = arith.constant 0 : index
    %34 = vector.load %arg8[%33, %c0_13] : memref<8x16xf32, #tpu.memory_space<vmem>>, vector<8x16xf32>
    tpu.vector_store %arg8[%33, %c0_13], %32 {strides = array<i32>} : memref<8x16xf32, #tpu.memory_space<vmem>>, vector<8x16xf32>,
    %35 = arith.index_cast %1 : i32 to index
    %c0_14 = arith.constant 0 : index
    %36 = vector.load %arg6[%35, %c0_14] : memref<8x1xf32, #tpu.memory_space<vmem>>, vector<8x1xf32>
    tpu.vector_store %arg6[%35, %c0_14], %12 {strides = array<i32>} : memref<8x1xf32, #tpu.memory_space<vmem>>, vector<8x1xf32>,
    %c0_i32_15 = arith.constant 0 : i32
    %37 = arith.cmpi eq, %arg0, %c0_i32_15 : i32
    %38 = arith.extui %37 : i1 to i32
    %c0_i32_16 = arith.constant 0 : i32
    %39 = arith.cmpi ne, %38, %c0_i32_16 : i32
    scf.if %39 {
      %40 = arith.index_cast %1 : i32 to index
      %c0_17 = arith.constant 0 : index
      %41 = vector.load %arg7[%40, %c0_17] : memref<8x1xf32, #tpu.memory_space<vmem>>, vector<8x1xf32>
      %cst_18 = arith.constant 1.000000e+00 : f32
      %42 = vector.broadcast %cst_18 : f32 to vector<8x1xf32>
      %43 = arith.divf %42, %41 : vector<8x1xf32>
      %44 = arith.index_cast %1 : i32 to index
      %c0_19 = arith.constant 0 : index
      %45 = vector.load %arg8[%44, %c0_19] : memref<8x16xf32, #tpu.memory_space<vmem>>, vector<8x16xf32>
      %46 = vector.broadcast %43 : vector<8x1xf32> to vector<8x16xf32>
      %47 = arith.mulf %45, %46 : vector<8x16xf32>
      %c0_20 = arith.constant 0 : index
      %c0_21 = arith.constant 0 : index
      %48 = vector.load %arg5[%c0_20, %c0_21] : memref<8x16xf32, #tpu.memory_space<vmem>>, vector<8x16xf32>
      tpu.vector_store %arg5[%c0_20, %c0_21], %47 {strides = array<i32>} : memref<8x16xf32, #tpu.memory_space<vmem>>, vector<8x16xf32>,
    } else {
    }
    return
  }
  func.func @transform_0(%arg0: i32, %arg1: i32) -> (i32, i32) {
    %c0_i32 = arith.constant 0 : i32
    %c0_i32_0 = arith.constant 0 : i32
    return %arg1, %c0_i32 : i32, i32
  }
  func.func @transform_1(%arg0: i32, %arg1: i32) -> (i32, i32) {
    %c0_i32 = arith.constant 0 : i32
    %c0_i32_0 = arith.constant 0 : i32
    return %c0_i32, %arg0 : i32, i32
  }
  func.func @transform_2(%arg0: i32, %arg1: i32) -> (i32, i32) {
    %c0_i32 = arith.constant 0 : i32
    %c0_i32_0 = arith.constant 0 : i32
    return %arg0, %c0_i32 : i32, i32
  }
  func.func @transform_3(%arg0: i32, %arg1: i32) -> (i32, i32) {
    %c0_i32 = arith.constant 0 : i32
    %c0_i32_0 = arith.constant 0 : i32
    return %arg1, %c0_i32 : i32, i32
  }
}

</mosaic_0001>

<bundles_post_ra>
// kernel: tpu_custom_call.1
= control target key start
LH: loop header
LB: loop body
LE: loop exit
PB: predicated region body
PF: predicated region fallthrough
CT: control target
= control target key end

     0   :  { %vm35_vm0 = vcmask 1041408   ;;  %v333_v1 = vmov 0.0   ;;  %vm334_vm1 = vmmov 0   ;;  %s418_s0 = inlined_call_operand.vmem [shape: f32[8,10], index: 0, kind: input, shape index: {}]   ;;  %s419_s1 = inlined_call_operand.vmem [shape: f32[10,64], index: 1, kind: input, shape index: {}]   ;;  %s420_s2 = inlined_call_operand.vmem [shape: f32[64,16], index: 2, kind: input, shape index: {}]   ;;  %s421_s3 = inlined_call_operand.hbm [shape: f32[8,16], index: 3, kind: output, shape index: {}]  }
   0x1   :  { %v30_v0 = vld [vmem:[%s419_s1 + $0x8] sm:$0x3]  ;;  %272 = vmatprep.subr.mxu0 %v333_v1  ;;  %v29_v2 = vld [vmem:[%s419_s1] sm:$0xff]  ;;  %276 = vmatprep.mubr.msk.f32.mxu0 %vm334_vm1, %v333_v1 }
   0x2   :  { %8 = vsyncpa [#allocation6], 0  ;;  %273 = vmatpush3.msk.msra.mxu0 %vm35_vm0, %v30_v0  ;;  %v28_v3 = vld [vmem:[%s418_s0] sm:$0xff]  ;;  %vm31_vm2 = vcmask 80896   ;;  %279 = vmatprep.subr.mxu1 %v333_v1  ;;  %vm111_vm3 = vcmask 523264   ;;  %vm21_vm4 = vcmask 7168  }
   0x3   :  { %274 = vmatprep.subr.mxu0 %v333_v1  ;;  %295 = vmatprep.mubr.msk.f32.mxu1 %vm334_vm1, %v333_v1  ;;  %v335_v7 = vmov -inf   ;;  %24 = vst.msk [vmem:[#allocation3] sm:$0xff] %vm21_vm4, %v333_v1  ;;  %v336_v8 = vmov 0   ;;  %v151_v12 = vld [vmem:[%s420_s2 + $0x38] sm:$0xff]  ;;  %v150_v14 = vld [vmem:[%s420_s2 + $0x30] sm:$0xff]  ;;  %v149_v15 = vld [vmem:[%s420_s2 + $0x28] sm:$0xff] }
   0x4   :  { %275 = vmatpush3.msra.mxu0 %v29_v2  ;;  %22 = vst.msk [vmem:[#allocation2] sm:$0xff] %vm21_vm4, %v335_v7  ;;  %303 = vset.pattern.permute.xlu0 %v336_v8  ;;  %v148_v16 = vld [vmem:[%s420_s2 + $0x20] sm:$0xff]  ;;  %v147_v17 = vld [vmem:[%s420_s2 + $0x18] sm:$0xff]  ;;  %v146_v18 = vld [vmem:[%s420_s2 + $0x10] sm:$0xff]  ;;  %vm26_vm5 = vcmask 130048  }
   0x5   :  { %277 = vmatmul.mubr.msk.f32.vlgmr.msra.gmra.mxu0 %vm31_vm2, %v28_v3  ;;  %304 = vset.pattern.permute.xlu1 %v336_v8  ;;  %v145_v19 = vld [vmem:[%s420_s2 + $0x8] sm:$0xff]  ;;  %v144_v20 = vld [vmem:[%s420_s2] sm:$0xff]  ;;  %27 = vst.msk [vmem:[#allocation4] sm:$0xff] %vm26_vm5, %v333_v1  ;;  %s337_s2 = smov [#allocation5]  }
   0x6   :  { %280 = vmatpush3.msra.mxu1 %v151_v12  ;;  %s249_s5 = sshll.u32 %s337_s2, 4  ;;  %s250_s5 = int_to_ptr.vmem [resolvable:$true] %s249_s5 }
   0x7   :  { %281 = vmatprep.subr.mxu1 %v333_v1  ;;  %s311_s6 = scalar_lea.vmem %s250_s5, 128  ;;  %p316_p1 = scmp.lt.s32.totalorder %s250_s5, %s250_s5 }
   0x8   :  { %282 = vmatpush3.msra.mxu1 %v150_v14  ;;  %p312_p0 = scmp.ne.s32.totalorder %s250_s5, %s311_s6  ;;  %p317_p2 = scmp.lt.s32.totalorder %s311_s6, %s311_s6 }
   0x9   :  { %283 = vmatprep.subr.mxu1 %v333_v1 }
   0xa   :  { %284 = vmatpush3.msra.mxu1 %v149_v15  ;;  %v128_v28 = vld [vmem:[#allocation3] sm:$0xff]  ;;  %p318_p3 = por %p317_p2, %p316_p1 }
   0xb   :  { %v110_v9 = vld [vmem:[#allocation2] sm:$0xff]  ;;  %285 = vmatprep.subr.mxu1 %v333_v1 }
   0xc   :  { %286 = vmatpush3.msra.mxu1 %v148_v16  ;;  %v137_v34 = vld [vmem:[#allocation4] sm:$0xff]  ;;  %p319_p4 = pnand %p318_p3, %p312_p0 }
   0xd   :  { %287 = vmatprep.subr.mxu1 %v333_v1 }
   0xe   :  { %288 = vmatpush3.msra.mxu1 %v147_v17 }
   0xf   :  { %289 = vmatprep.subr.mxu1 %v333_v1 }
  0x10   :  { %290 = vmatpush3.msra.mxu1 %v146_v18 }
  0x11   :  { %291 = vmatprep.subr.mxu1 %v333_v1 }
  0x12   :  { %292 = vmatpush3.msra.mxu1 %v145_v19 }
  0x13   :  { %293 = vmatprep.subr.mxu1 %v333_v1 }
  0x14   :  { %294 = vmatpush3.msra.mxu1 %v144_v20 }
  0xc5   :  { %v105_v4 = vpop.f32.mrf.mxu0 }
  0xc6   :  { %v112_v5 = vsel %vm111_vm3, %v105_v4, -inf }
  0xc7   :  { %113 = vmax.xlane.f32.xlu0 %v112_v5  ;;  %v278_v6 = vpop.f32.mrf.mxu0 }
 0x150   :  { %v114_v10 = vpop.xlane.xlu0 %113 }
 0x151   :  { %v115_v11 = vmax.f32 %v110_v9, %v114_v10 }
 0x153   :  { %v116_v13 = vsub.f32 %v110_v9, %v115_v11  ;;  %228 = vst.msk [vmem:[#allocation2] sm:$0xff] %vm21_vm4, %v115_v11  ;;  %121 = vperm.xlu0 %303, %v115_v11  }
 0x155   :  { %v117_v25 = vmul.f32 1.442695, %v116_v13 }
 0x1ce   :  { %v122_v21 = vpop.permute.xlu0 %121 }
 0x1cf   :  { %v124_v22 = vsub.f32 %v105_v4, %v122_v21 }
 0x1d1   :  { %v125_v23 = vmul.f32 1.442695, %v124_v22 }
 0x1d3   :  { %305 = vpow2.f32 %v125_v23 }
 0x1d4   :  { %307 = vpow2.f32 %v117_v25 }
 0x1e0   :  { %v306_v24 = vpop.eup %305 }
 0x1e1   :  { %296 = vmatmul.mubr.msk.f32.vlgmr.msra.gmra.mxu1 %vm111_vm3, %v306_v24  ;;  %v130_v26 = vsel %vm111_vm3, %v306_v24, 0.0  ;;  %v308_v27 = vpop.eup %307 }
 0x1e2   :  { %131 = vadd.xlane.f32.xlu1 %v130_v26  ;;  %v129_v29 = vmul.f32 %v308_v27, %v128_v28 }
 0x1f3   :  { %140 = vperm.xlu1 %304, %v308_v27  }
 0x26b   :  { %v132_v30 = vpop.xlane.xlu1 %131 }
 0x26c   :  { %v133_v31 = vadd.f32 %v132_v30, %v129_v29 }
 0x26e   :  { %135 = vst.msk [vmem:[#allocation3] sm:$0xff] %vm21_vm4, %v133_v31 }
 0x26f   :  { %v141_v35 = vpop.permute.xlu1 %140 }
 0x270   :  { %v143_v36 = vmul.f32 %v141_v35, %v137_v34 }
 0x275   :  { %v232_v32 = vld [vmem:[#allocation3] sm:$0xff] }
 0x276   :  { %309 = vrcp.f32 %v232_v32 }
 0x283   :  { %v310_v33 = vpop.eup %309 }
 0x284   :  { %238 = vperm.xlu1 %304, %v310_v33  }
 0x2a1   :  { %v221_v37 = vpop.f32.mrf.mxu1 }
 0x2a2   :  { %v225_v38 = vadd.f32 %v221_v37, %v143_v36 }
 0x2a3   :  { %v297_v39 = vpop.f32.mrf.mxu1 }
 0x2a4   :  { %227 = vst.msk [vmem:[#allocation4] sm:$0xff] %vm26_vm5, %v225_v38 }
 0x2ab   :  { %v235_v40 = vld [vmem:[#allocation4] sm:$0xff] }
 0x2ff   :  { %v239_v41 = vpop.permute.xlu1 %238 }
 0x300   :  { %v241_v42 = vmul.f32 %v239_v41, %v235_v40 }
 0x302   :  { %242 = vst.msk [vmem:[#allocation5] sm:$0xff] %vm26_vm5, %v241_v42 }
 0x303   :  { %322 = shalt.err (!%p319_p4)
}
 0x304   :  { %252 = dma.vmem_to_hbm [thread:$0]  %s250_s5, 128, %s421_s3, [#allocation6]  }
 0x305   :  { %331 = dma.done.wait [#allocation6], 128  }
 0x306   :  { %332 = vsyncadd [#allocation6], 4294967168 }
 0x307   :  { %256 = vsyncpa [#allocation6], 1 }

</bundles_post_ra>
